<compile_context>
chip_gen: v7x
topology: tpu7x:2x2x1
jax: 0.10.0
libtpu: 0.0.40
codegen_flags: <defaults>
</compile_context>

<pallas_src>
import jax
import jax.numpy as jnp
from jax import lax
from jax.experimental import pallas as pl
from jax.experimental.pallas import tpu as pltpu

LANES = 128              # vreg lane width
ACC_ROWS = 64            # resident accumulator height -> 8 independent vreg chains (ILP)
_FALLBACK_MAX = 1 << 16  # below this many elements, fused XLA beats pallas_call overhead


def _round_up(x, m):
    return ((x + m - 1) // m) * m


def _chip_defaults(itemsize):
    """Per-generation streaming-block bytes / TensorCore split / scoped-VMEM choice."""
    kind = ""
    try:
        kind = (getattr(jax.devices()[0], "device_kind", "") or "").lower()
    except Exception:
        pass
    if "v7" in kind or "7x" in kind:
        # 2 TCs/chip, ~3.2 TB/s per TC, 64 MiB physical VMEM: big blocks + explicit limit.
        # TODO(synk): verify via xprof that the size-2 "parallel" axis really lands on both
        # TensorCores; if not, switch that axis to pltpu.CORE_PARALLEL.
        block_bytes, splits, vmem = 4 << 20, 2, 48 << 20
    elif "v6" in kind:
        block_bytes, splits, vmem = 2 << 20, 1, None          # fits 32 MiB default scoped
    elif "v5 lite" in kind or "v5e" in kind or "v5lite" in kind:
        block_bytes, splits, vmem = 2 << 20, 1, 28 << 20      # headroom over 16 MiB default
    elif "v4" in kind or "v5p" in kind or kind.endswith("v5"):
        block_bytes, splits, vmem = 2 << 20, 2, None          # megacore chips
    else:
        block_bytes, splits, vmem = 2 << 20, 1, None
    # dtype-aware: constant bytes per streamed block; multiple of ACC_ROWS (=64) also covers
    # the (8/16/32, 128) min-tile packing for f32/bf16/int8.
    cap = max(ACC_ROWS, (block_bytes // (LANES * itemsize)) // ACC_ROWS * ACC_ROWS)
    return cap, splits, vmem


@jax.jit
def _fused_l2(t, p):
    """Fused XLA map-reduce: reads 2N bytes, no intermediate copies."""
    d = t.astype(jnp.float32) - p.astype(jnp.float32)
    return jnp.sqrt(jnp.sum(d * d))


def _make_kernel(rows, tile_rows, tiles_per_split, any_partial):
    def kernel(t_ref, p_ref, o_ref):
        i = pl.program_id(0)   # TensorCore split ("parallel")
        k = pl.program_id(1)   # streaming / reduction axis ("arbitrary", resident output)

        @pl.when(k == 0)
        def _():
            o_ref[...] = jnp.zeros_like(o_ref)

        def accumulate(mask_rows):
            d = t_ref[...].astype(jnp.float32) - p_ref[...].astype(jnp.float32)
            if mask_rows:
                # Zero rows beyond the real array: covers the partial last tile (Pallas does
                # not zero the padded region of a partial block) and fully out-of-range
                # duplicate tiles produced by the clamped index_map.
                tile_idx = i * tiles_per_split + k
                row_ids = tile_idx * tile_rows + lax.broadcasted_iota(
                    jnp.int32, (tile_rows, 1), 0)
                d = jnp.where(row_ids < rows, d, 0.0)
            sq = d * d
            # Reduce the tile into a resident (ACC_ROWS, 128) block with pure VPU adds
            # (8 independent vreg chains); the single cross-lane/sublane reduction happens
            # once, outside the kernel.
            o_ref[0] += jnp.sum(
                sq.reshape(tile_rows // ACC_ROWS, ACC_ROWS, LANES), axis=0)

        if any_partial:
            tile_end = (i * tiles_per_split + k + 1) * tile_rows

            @pl.when(tile_end <= rows)      # interior full tiles: no mask ops at all
            def _():
                accumulate(False)

            @pl.when(tile_end > rows)       # final / overflow tiles only
            def _():
                accumulate(True)
        else:
            accumulate(False)

    return kernel


def l2_dist(target: jax.Array, pred: jax.Array) -> jax.Array:
    """Pallas equivalent of torch.dist(target, pred, p=2). Returns a 0-d float32 array."""
    assert target.shape == pred.shape, "target and pred must have the same shape"
    t = jnp.ravel(target)
    p = jnp.ravel(pred)
    n = t.shape[0]
    assert n < 2 ** 31, "int32 row-index math in the kernel assumes < 2^31 elements"

    # Tiny inputs: a fused XLA reduction is faster than kernel launch + pipeline prologue.
    if n <= _FALLBACK_MAX:
        return _fused_l2(t, p)

    # Non-multiple-of-128 lengths: avoid the old jnp.pad path (it copies BOTH inputs in HBM,
    # ~3x the traffic).  XLA's fused subtract-square-reduce reads exactly 2N bytes.
    # TODO(synk): a fully copy-free ragged Pallas path would need 1-D blocks + flat-index
    # masking; left to the XLA fallback for lowering robustness.
    if n % LANES:
        return _fused_l2(t, p)

    itemsize = max(jnp.dtype(t.dtype).itemsize, jnp.dtype(p.dtype).itemsize)
    cap, num_splits, vmem_limit = _chip_defaults(itemsize)

    rows = n // LANES
    t2 = t.reshape(rows, LANES)   # free (metadata-only) reshape: n is a multiple of 128
    p2 = p.reshape(rows, LANES)

    # Adaptive tile: ~block-bytes cap, but never bigger than the per-split work, never
    # bigger than the array, always a multiple of ACC_ROWS (=> multiple of 8 sublanes).
    tile_rows = min(cap, _round_up(pl.cdiv(rows, num_splits), ACC_ROWS))
    tile_rows = max(ACC_ROWS, min(tile_rows, (rows // ACC_ROWS) * ACC_ROWS))
    tiles_total = pl.cdiv(rows, tile_rows)
    num_splits = max(1, min(num_splits, tiles_total))
    tiles_per_split = pl.cdiv(tiles_total, num_splits)
    any_partial = (num_splits * tiles_per_split * tile_rows) != rows

    def tile_map(i, k):
        # Clamp to a valid block: splits that run past the end re-read the last real tile;
        # the in-kernel row mask zeroes their contribution.
        return (jnp.minimum(i * tiles_per_split + k, tiles_total - 1), 0)

    kernel = _make_kernel(rows, tile_rows, tiles_per_split, any_partial)

    partials = pl.pallas_call(
        kernel,
        out_shape=jax.ShapeDtypeStruct((num_splits, ACC_ROWS, LANES), jnp.float32),
        grid_spec=pltpu.PrefetchScalarGridSpec(
            num_scalar_prefetch=0,
            grid=(num_splits, tiles_per_split),
            in_specs=[
                pl.BlockSpec((tile_rows, LANES), tile_map),
                pl.BlockSpec((tile_rows, LANES), tile_map),
            ],
            out_specs=pl.BlockSpec((1, ACC_ROWS, LANES), lambda i, k: (i, 0, 0)),
        ),
        compiler_params=pltpu.CompilerParams(
            dimension_semantics=("parallel", "arbitrary"),
            vmem_limit_bytes=vmem_limit,
        ),
    )(t2, p2)

    # Single final reduction + sqrt (trivial: num_splits * 64 * 128 elements).
    return jnp.sqrt(jnp.sum(partials, dtype=jnp.float32))


if __name__ == "__main__":
    key = jax.random.PRNGKey(0)

    def reference(t, p):
        d = t.astype(jnp.float32) - p.astype(jnp.float32)
        return jnp.sqrt(jnp.sum(d * d))

    def make_case(k, data_size):
        # Mimic the surrounding script: target = [random head, constant -0.03 tail], pred random.
        k1, k2 = jax.random.split(k)
        target_head = jax.random.normal(k1, (data_size,), dtype=jnp.float32)
        target_tail = -0.03 * jnp.ones((data_size,), dtype=jnp.float32)
        target = jnp.concatenate([target_head, target_tail], axis=0)
        pred = jax.random.normal(k2, (2 * data_size,), dtype=jnp.float32)
        return target, pred

    dist = jax.jit(l2_dist)

    cases = [
        65536,   # 131072 elems: kernel path, exact tiling (unmasked fast path)
        65728,   # 131456 elems: kernel path, partial last tile (pl.when-gated mask path)
        50001,   # 100002 elems: length not a multiple of 128 -> fused-XLA ragged path
        1000,    #   2000 elems: tiny-input fused-XLA fallback
    ]
    keys = jax.random.split(key, len(cases))
    for k, ds in zip(keys, cases):
        t, p = make_case(k, ds)
        got = jax.block_until_ready(dist(t, p))
        want = jax.block_until_ready(reference(t, p))
        assert jnp.allclose(got, want, rtol=1e-4, atol=1e-3), (ds, got, want)

    print("KERNEL_OK")
</pallas_src>

<mosaic_0001>
module attributes {stable_mosaic.version = 11 : i64} {
  func.func @kernel(%arg0: i32, %arg1: i32, %arg2: memref<1024x128xf32, #tpu.memory_space<vmem>>, %arg3: memref<1024x128xf32, #tpu.memory_space<vmem>>, %arg4: memref<1x64x128xf32, #tpu.memory_space<vmem>>) attributes {dimension_semantics = [#tpu.dimension_semantics<parallel>, #tpu.dimension_semantics<arbitrary>], iteration_bounds = array<i64: 1, 1>, scalar_prefetch = 0 : i64, scratch_operands = 0 : i64, tpu.core_type = #tpu.core_type<tc>, window_params = [{transform_indices = @transform_0, window_bounds = array<i64: 1024, 128>}, {transform_indices = @transform_1, window_bounds = array<i64: 1024, 128>}, {transform_indices = @transform_2, window_bounds = array<i64: 1, 64, 128>}]} {
    %c0_i32 = arith.constant 0 : i32
    %0 = arith.cmpi eq, %arg1, %c0_i32 : i32
    %1 = arith.extui %0 : i1 to i32
    %c0_i32_0 = arith.constant 0 : i32
    %2 = arith.cmpi ne, %1, %c0_i32_0 : i32
    scf.if %2 {
      %cst_10 = arith.constant 0.000000e+00 : f32
      %15 = vector.broadcast %cst_10 : f32 to vector<1x64x128xf32>
      %c0_11 = arith.constant 0 : index
      %c0_12 = arith.constant 0 : index
      %c0_13 = arith.constant 0 : index
      %16 = vector.load %arg4[%c0_11, %c0_12, %c0_13] : memref<1x64x128xf32, #tpu.memory_space<vmem>>, vector<1x64x128xf32>
      tpu.vector_store %arg4[%c0_11, %c0_12, %c0_13], %15 {strides = array<i32>} : memref<1x64x128xf32, #tpu.memory_space<vmem>>, vector<1x64x128xf32>,
    } else {
    }
    %c0 = arith.constant 0 : index
    %c0_1 = arith.constant 0 : index
    %3 = vector.load %arg2[%c0, %c0_1] : memref<1024x128xf32, #tpu.memory_space<vmem>>, vector<1024x128xf32>
    %c0_2 = arith.constant 0 : index
    %c0_3 = arith.constant 0 : index
    %4 = vector.load %arg3[%c0_2, %c0_3] : memref<1024x128xf32, #tpu.memory_space<vmem>>, vector<1024x128xf32>
    %5 = arith.subf %3, %4 : vector<1024x128xf32>
    %6 = arith.mulf %5, %5 : vector<1024x128xf32>
    %c0_4 = arith.constant 0 : index
    %c0_5 = arith.constant 0 : index
    %c0_6 = arith.constant 0 : index
    %7 = vector.load %arg4[%c0_4, %c0_5, %c0_6] : memref<1x64x128xf32, #tpu.memory_space<vmem>>, vector<1x64x128xf32>
    %8 = vector.shape_cast %7 : vector<1x64x128xf32> to vector<64x128xf32>
    %9 = vector.shape_cast %6 : vector<1024x128xf32> to vector<16x64x128xf32>
    %cst = arith.constant dense<0.000000e+00> : vector<64x128xf32>
    %10 = vector.multi_reduction <add>, %9, %cst [0] : vector<16x64x128xf32> to vector<64x128xf32>
    %11 = arith.addf %8, %10 : vector<64x128xf32>
    %c0_7 = arith.constant 0 : index
    %c0_8 = arith.constant 0 : index
    %c0_9 = arith.constant 0 : index
    %12 = vector.load %arg4[%c0_7, %c0_8, %c0_9] : memref<1x64x128xf32, #tpu.memory_space<vmem>>, vector<1x64x128xf32>
    %13 = vector.shape_cast %12 : vector<1x64x128xf32> to vector<64x128xf32>
    %14 = vector.shape_cast %11 : vector<64x128xf32> to vector<1x64x128xf32>
    tpu.vector_store %arg4[%c0_7, %c0_8, %c0_9], %14 {strides = array<i32>} : memref<1x64x128xf32, #tpu.memory_space<vmem>>, vector<1x64x128xf32>,
    return
  }
  func.func @transform_0(%arg0: i32, %arg1: i32) -> (i32, i32) {
    %c1_i32 = arith.constant 1 : i32
    %0 = arith.muli %arg0, %c1_i32 : i32
    %1 = arith.addi %0, %arg1 : i32
    %c0_i32 = arith.constant 0 : i32
    %2 = arith.minsi %1, %c0_i32 : i32
    %c0_i32_0 = arith.constant 0 : i32
    %c0_i32_1 = arith.constant 0 : i32
    return %2, %c0_i32_0 : i32, i32
  }
  func.func @transform_1(%arg0: i32, %arg1: i32) -> (i32, i32) {
    %c1_i32 = arith.constant 1 : i32
    %0 = arith.muli %arg0, %c1_i32 : i32
    %1 = arith.addi %0, %arg1 : i32
    %c0_i32 = arith.constant 0 : i32
    %2 = arith.minsi %1, %c0_i32 : i32
    %c0_i32_0 = arith.constant 0 : i32
    %c0_i32_1 = arith.constant 0 : i32
    return %2, %c0_i32_0 : i32, i32
  }
  func.func @transform_2(%arg0: i32, %arg1: i32) -> (i32, i32, i32) {
    %c0_i32 = arith.constant 0 : i32
    %c0_i32_0 = arith.constant 0 : i32
    %c0_i32_1 = arith.constant 0 : i32
    return %arg0, %c0_i32, %c0_i32_0 : i32, i32, i32
  }
}

</mosaic_0001>

<bundles_post_ra>
// kernel: l2_dist.1
= control target key start
LH: loop header
LB: loop body
LE: loop exit
PB: predicated region body
PF: predicated region fallthrough
CT: control target
= control target key end

     0   :  { %7 = vsyncpa [#allocation3], 0  ;;  %s857_s0 = inlined_call_operand.hbm [shape: f32[1024,128], index: 0, kind: input, shape index: {}]   ;;  %s858_s1 = inlined_call_operand.hbm [shape: f32[1024,128], index: 1, kind: input, shape index: {}]   ;;  %s859_s2 = inlined_call_operand.vmem [shape: f32[1,64,128], index: 2, kind: output, shape index: {}]  }
   0x1   :  { %8 = vsyncpa [#allocation5], 0  ;;  %s790_s9 = smov [#allocation2]   ;;  %s742_s13 = scalar_lea.hbm %s857_s0, 16384 }
   0x2   :  { %s20_s10 = sshll.u32 %s790_s9, 4  ;;  %p743_p0 = scmp.ne.s32.totalorder %s857_s0, %s742_s13  ;;  %s21_s10 = int_to_ptr.vmem [resolvable:$true] %s20_s10 }
   0x3   :  { %p746_p1 = scmp.lt.u32.totalorder %s742_s13, %s857_s0 }
   0x5   :  { %p748_p2 = pnand %p746_p1, %p743_p0 }
   0x7   :  { %751 = shalt.err (!%p748_p2)
}
   0x8   :  { %s752_s18 = scalar_lea.vmem %s21_s10, 16384  ;;  %p757_p4 = scmp.lt.s32.totalorder %s21_s10, %s21_s10 }
   0x9   :  { %p753_p3 = scmp.ne.s32.totalorder %s21_s10, %s752_s18  ;;  %p758_p5 = scmp.lt.s32.totalorder %s752_s18, %s752_s18 }
   0xb   :  { %p759_p6 = por %p758_p5, %p757_p4 }
   0xd   :  { %p760_p7 = pnand %p759_p6, %p753_p3 }
   0xf   :  { %763 = shalt.err (!%p760_p7)
}
  0x10   :  { %s791_s19 = smov 128   ;;  %s792_s20 = smov 8  }
  0x11   :  { %26 = dma.hbm_to_vmem [thread:$0]  %s857_s0, 16384, %s21_s10, [#allocation3], %s791_s19, %s791_s19, %s792_s20  }
  0x12   :  { %s793_s23 = smov [#allocation4]   ;;  %s764_s27 = scalar_lea.hbm %s858_s1, 16384 }
  0x13   :  { %s38_s24 = sshll.u32 %s793_s23, 4  ;;  %p765_p8 = scmp.ne.s32.totalorder %s858_s1, %s764_s27  ;;  %s39_s24 = int_to_ptr.vmem [resolvable:$true] %s38_s24 }
  0x14   :  { %p768_p9 = scmp.lt.u32.totalorder %s764_s27, %s858_s1 }
  0x16   :  { %p770_p10 = pnand %p768_p9, %p765_p8 }
  0x18   :  { %773 = shalt.err (!%p770_p10)
}
  0x19   :  { %s774_s4 = scalar_lea.vmem %s39_s24, 16384  ;;  %p779_p12 = scmp.lt.s32.totalorder %s39_s24, %s39_s24 }
  0x1a   :  { %p775_p11 = scmp.ne.s32.totalorder %s39_s24, %s774_s4  ;;  %p780_p13 = scmp.lt.s32.totalorder %s774_s4, %s774_s4 }
  0x1c   :  { %p781_p0 = por %p780_p13, %p779_p12 }
  0x1e   :  { %p782_p1 = pnand %p781_p0, %p775_p11 }
  0x20   :  { %785 = shalt.err (!%p782_p1)
}
  0x21   :  { %44 = dma.hbm_to_vmem [thread:$0]  %s858_s1, 16384, %s39_s24, [#allocation5], %s791_s19, %s791_s19, %s792_s20  }
  0x22   :  { %786 = dma.done.wait [#allocation3], 16384  }
  0x23   :  { %787 = vsyncadd [#allocation3], 4294950912 }
  0x24   :  { %788 = dma.done.wait [#allocation5], 16384  }
  0x25   :  { %789 = vsyncadd [#allocation5], 4294950912  ;;  %v71_v0 = vld [vmem:[#allocation2] sm:$0xff]  ;;  %v72_v27 = vld [vmem:[#allocation2 + $0x8] sm:$0xff] }
  0x26   :  { %v79_v1 = vld [vmem:[#allocation2 + $0x40] sm:$0xff]  ;;  %v80_v28 = vld [vmem:[#allocation2 + $0x48] sm:$0xff] }
  0x27   :  { %v87_v2 = vld [vmem:[#allocation2 + $0x80] sm:$0xff]  ;;  %v200_v33 = vld [vmem:[#allocation4 + $0x8] sm:$0xff] }
  0x28   :  { %v199_v3 = vld [vmem:[#allocation4] sm:$0xff]  ;;  %v208_v34 = vld [vmem:[#allocation4 + $0x48] sm:$0xff]  ;;  %v328_v43 = vsub.f32 %v72_v27, %v200_v33  ;;  %v201_v27 = vld [vmem:[#allocation4 + $0x10] sm:$0xff] }
  0x29   :  { %v207_v4 = vld [vmem:[#allocation4 + $0x40] sm:$0xff]  ;;  %v327_v6 = vsub.f32 %v71_v0, %v199_v3  ;;  %v88_v37 = vld [vmem:[#allocation2 + $0x88] sm:$0xff]  ;;  %v336_v44 = vsub.f32 %v80_v28, %v208_v34  ;;  %v209_v28 = vld [vmem:[#allocation4 + $0x50] sm:$0xff] }
  0x2a   :  { %v215_v5 = vld [vmem:[#allocation4 + $0x80] sm:$0xff]  ;;  %v335_v7 = vsub.f32 %v79_v1, %v207_v4  ;;  %v216_v38 = vld [vmem:[#allocation4 + $0x88] sm:$0xff]  ;;  %v456_v63 = vmul.f32 %v328_v43, %v328_v43 }
  0x2b   :  { %v95_v8 = vld [vmem:[#allocation2 + $0xc0] sm:$0xff]  ;;  %v343_v10 = vsub.f32 %v87_v2, %v215_v5  ;;  %v455_v14 = vmul.f32 %v327_v6, %v327_v6  ;;  %v96_v45 = vld [vmem:[#allocation2 + $0xc8] sm:$0xff]  ;;  %v344_v52 = vsub.f32 %v88_v37, %v216_v38  ;;  %v464_v0 = vmul.f32 %v336_v44, %v336_v44 }
  0x2c   :  { %v223_v9 = vld [vmem:[#allocation4 + $0xc0] sm:$0xff]  ;;  %v463_v15 = vmul.f32 %v335_v7, %v335_v7  ;;  %v224_v46 = vld [vmem:[#allocation4 + $0xc8] sm:$0xff] }
  0x2d   :  { %v103_v11 = vld [vmem:[#allocation2 + $0x100] sm:$0xff]  ;;  %v351_v13 = vsub.f32 %v95_v8, %v223_v9  ;;  %v471_v19 = vmul.f32 %v343_v10, %v343_v10  ;;  %v104_v56 = vld [vmem:[#allocation2 + $0x108] sm:$0xff]  ;;  %v352_v62 = vsub.f32 %v96_v45, %v224_v46  ;;  %v472_v8 = vmul.f32 %v344_v52, %v344_v52  ;;  %v97_v46 = vld [vmem:[#allocation2 + $0xd0] sm:$0xff] }
  0x2e   :  { %v231_v12 = vld [vmem:[#allocation4 + $0x100] sm:$0xff]  ;;  %v591_v26 = vadd.f32 %v463_v15, %v455_v14  ;;  %v232_v57 = vld [vmem:[#allocation4 + $0x108] sm:$0xff] }
  0x2f   :  { %v111_v16 = vld [vmem:[#allocation2 + $0x140] sm:$0xff]  ;;  %v359_v18 = vsub.f32 %v103_v11, %v231_v12  ;;  %v479_v25 = vmul.f32 %v351_v13, %v351_v13  ;;  %v112_v60 = vld [vmem:[#allocation2 + $0x148] sm:$0xff]  ;;  %v360_v7 = vsub.f32 %v104_v56, %v232_v57 }
  0x30   :  { %v239_v17 = vld [vmem:[#allocation4 + $0x140] sm:$0xff]  ;;  %v592_v32 = vadd.f32 %v591_v26, %v471_v19  ;;  %v240_v61 = vld [vmem:[#allocation4 + $0x148] sm:$0xff]  ;;  %v81_v26 = vld [vmem:[#allocation2 + $0x50] sm:$0xff] }
  0x31   :  { %v119_v20 = vld [vmem:[#allocation2 + $0x180] sm:$0xff]  ;;  %v367_v24 = vsub.f32 %v111_v16, %v239_v17  ;;  %v487_v31 = vmul.f32 %v359_v18, %v359_v18  ;;  %v120_v11 = vld [vmem:[#allocation2 + $0x188] sm:$0xff]  ;;  %v368_v13 = vsub.f32 %v112_v60, %v240_v61  ;;  %v488_v34 = vmul.f32 %v360_v7, %v360_v7 }
  0x32   :  { %v247_v21 = vld [vmem:[#allocation4 + $0x180] sm:$0xff]  ;;  %v593_v42 = vadd.f32 %v592_v32, %v479_v25  ;;  %v248_v12 = vld [vmem:[#allocation4 + $0x188] sm:$0xff] }
  0x33   :  { %v127_v22 = vld [vmem:[#allocation2 + $0x1c0] sm:$0xff]  ;;  %v375_v30 = vsub.f32 %v119_v20, %v247_v21  ;;  %v495_v41 = vmul.f32 %v367_v24, %v367_v24  ;;  %v128_v19 = vld [vmem:[#allocation2 + $0x1c8] sm:$0xff]  ;;  %v480_v21 = vmul.f32 %v352_v62, %v352_v62  ;;  %v376_v33 = vsub.f32 %v120_v11, %v248_v12 }
  0x34   :  { %v255_v23 = vld [vmem:[#allocation4 + $0x1c0] sm:$0xff]  ;;  %v594_v51 = vadd.f32 %v593_v42, %v487_v31  ;;  %v256_v20 = vld [vmem:[#allocation4 + $0x1c8] sm:$0xff]  ;;  %v217_v42 = vld [vmem:[#allocation4 + $0x90] sm:$0xff] }
  0x35   :  { %v135_v29 = vld [vmem:[#allocation2 + $0x200] sm:$0xff]  ;;  %v383_v36 = vsub.f32 %v127_v22, %v255_v23  ;;  %v503_v50 = vmul.f32 %v375_v30, %v375_v30  ;;  %v606_v22 = vadd.f32 %v464_v0, %v456_v63  ;;  %v73_v23 = vld [vmem:[#allocation2 + $0x10] sm:$0xff]  ;;  %v136_v31 = vld [vmem:[#allocation2 + $0x208] sm:$0xff] }
  0x36   :  { %v263_v35 = vld [vmem:[#allocation4 + $0x200] sm:$0xff]  ;;  %v595_v59 = vadd.f32 %v594_v51, %v495_v41  ;;  %v264_v32 = vld [vmem:[#allocation4 + $0x208] sm:$0xff]  ;;  %v89_v41 = vld [vmem:[#allocation2 + $0x90] sm:$0xff] }
  0x37   :  { %v143_v39 = vld [vmem:[#allocation2 + $0x240] sm:$0xff]  ;;  %v391_v49 = vsub.f32 %v135_v29, %v263_v35  ;;  %v511_v55 = vmul.f32 %v383_v36, %v383_v36  ;;  %v607_v35 = vadd.f32 %v606_v22, %v472_v8  ;;  %v144_v38 = vld [vmem:[#allocation2 + $0x248] sm:$0xff]  ;;  %v345_v61 = vsub.f32 %v89_v41, %v217_v42  ;;  %v113_v8 = vld [vmem:[#allocation2 + $0x150] sm:$0xff] }
  0x38   :  { %v271_v40 = vld [vmem:[#allocation4 + $0x240] sm:$0xff]  ;;  %v596_v6 = vadd.f32 %v595_v59, %v503_v50  ;;  %v272_v44 = vld [vmem:[#allocation4 + $0x248] sm:$0xff]  ;;  %v504_v59 = vmul.f32 %v376_v33, %v376_v33  ;;  %v121_v22 = vld [vmem:[#allocation2 + $0x190] sm:$0xff] }
  0x39   :  { %v151_v47 = vld [vmem:[#allocation2 + $0x280] sm:$0xff]  ;;  %v399_v54 = vsub.f32 %v143_v39, %v271_v40  ;;  %v519_v5 = vmul.f32 %v391_v49, %v391_v49  ;;  %v384_v39 = vsub.f32 %v128_v19, %v256_v20  ;;  %v496_v40 = vmul.f32 %v368_v13, %v368_v13  ;;  %v160_v56 = vld [vmem:[#allocation2 + $0x2c8] sm:$0xff]  ;;  %v257_v33 = vld [vmem:[#allocation4 + $0x1d0] sm:$0xff] }
  0x3a   :  { %v279_v48 = vld [vmem:[#allocation4 + $0x280] sm:$0xff]  ;;  %v597_v18 = vadd.f32 %v596_v6, %v511_v55  ;;  %v608_v45 = vadd.f32 %v607_v35, %v480_v21  ;;  %v337_v49 = vsub.f32 %v81_v26, %v209_v28  ;;  %v168_v57 = vld [vmem:[#allocation2 + $0x308] sm:$0xff]  ;;  %v400_v0 = vsub.f32 %v144_v38, %v272_v44  ;;  %v210_v44 = vld [vmem:[#allocation4 + $0x58] sm:$0xff] }
  0x3b   :  { %v159_v53 = vld [vmem:[#allocation2 + $0x2c0] sm:$0xff]  ;;  %v407_v1 = vsub.f32 %v151_v47, %v279_v48  ;;  %v527_v17 = vmul.f32 %v399_v54, %v399_v54  ;;  %v225_v47 = vld [vmem:[#allocation4 + $0xd0] sm:$0xff]  ;;  %v329_v48 = vsub.f32 %v73_v23, %v201_v27  ;;  %v392_v54 = vsub.f32 %v136_v31, %v264_v32  ;;  %v288_v63 = vld [vmem:[#allocation4 + $0x2c8] sm:$0xff] }
  0x3c   :  { %v287_v58 = vld [vmem:[#allocation4 + $0x2c0] sm:$0xff]  ;;  %v598_v30 = vadd.f32 %v597_v18, %v519_v5  ;;  %v609_v60 = vadd.f32 %v608_v45, %v488_v34  ;;  %v296_v6 = vld [vmem:[#allocation4 + $0x308] sm:$0xff]  ;;  %v465_v11 = vmul.f32 %v337_v49, %v337_v49  ;;  %v249_v23 = vld [vmem:[#allocation4 + $0x190] sm:$0xff]  ;;  %v416_v26 = vsub.f32 %v160_v56, %v288_v63 }
  0x3d   :  { %v167_v2 = vld [vmem:[#allocation2 + $0x300] sm:$0xff]  ;;  %v415_v10 = vsub.f32 %v159_v53, %v287_v58  ;;  %v535_v25 = vmul.f32 %v407_v1, %v407_v1  ;;  %v152_v53 = vld [vmem:[#allocation2 + $0x288] sm:$0xff]  ;;  %v512_v1 = vmul.f32 %v384_v39, %v384_v39  ;;  %v520_v18 = vmul.f32 %v392_v54, %v392_v54  ;;  %v265_v49 = vld [vmem:[#allocation4 + $0x210] sm:$0xff] }
  0x3e   :  { %v175_v3 = vld [vmem:[#allocation2 + $0x340] sm:$0xff]  ;;  %v599_v43 = vadd.f32 %v598_v30, %v527_v17  ;;  %v280_v58 = vld [vmem:[#allocation4 + $0x288] sm:$0xff]  ;;  %v610_v7 = vadd.f32 %v609_v60, %v496_v40  ;;  %v424_v27 = vsub.f32 %v168_v57, %v296_v6  ;;  %v528_v28 = vmul.f32 %v400_v0, %v400_v0  ;;  %v90_v56 = vld [vmem:[#allocation2 + $0x98] sm:$0xff] }
  0x3f   :  { %v295_v4 = vld [vmem:[#allocation4 + $0x300] sm:$0xff]  ;;  %v543_v37 = vmul.f32 %v415_v10, %v415_v10  ;;  %v457_v10 = vmul.f32 %v329_v48, %v329_v48  ;;  %v408_v17 = vsub.f32 %v152_v53, %v280_v58  ;;  %v312_v20 = vld [vmem:[#allocation4 + $0x388] sm:$0xff]  ;;  %v377_v42 = vsub.f32 %v121_v22, %v249_v23  ;;  %v137_v48 = vld [vmem:[#allocation2 + $0x210] sm:$0xff] }
  0x40   :  { %v303_v9 = vld [vmem:[#allocation4 + $0x340] sm:$0xff]  ;;  %v423_v24 = vsub.f32 %v167_v2, %v295_v4  ;;  %v600_v55 = vadd.f32 %v599_v43, %v535_v25  ;;  %v105_v2 = vld [vmem:[#allocation2 + $0x110] sm:$0xff]  ;;  %v353_v4 = vsub.f32 %v97_v46, %v225_v47  ;;  %v611_v21 = vadd.f32 %v610_v7, %v504_v59  ;;  %v192_v38 = vld [vmem:[#allocation2 + $0x3c8] sm:$0xff] }
  0x41   :  { %v183_v14 = vld [vmem:[#allocation2 + $0x380] sm:$0xff]  ;;  %v431_v36 = vsub.f32 %v175_v3, %v303_v9  ;;  %v233_v3 = vld [vmem:[#allocation4 + $0x110] sm:$0xff]  ;;  %v473_v25 = vmul.f32 %v345_v61, %v345_v61  ;;  %v621_v35 = vadd.f32 %v465_v11, %v457_v10  ;;  %v536_v41 = vmul.f32 %v408_v17, %v408_v17  ;;  %v82_v43 = vld [vmem:[#allocation2 + $0x58] sm:$0xff] }
  0x42   :  { %v191_v15 = vld [vmem:[#allocation2 + $0x3c0] sm:$0xff]  ;;  %v551_v52 = vmul.f32 %v423_v24, %v423_v24  ;;  %v601_v5 = vadd.f32 %v600_v55, %v543_v37  ;;  %v241_v9 = vld [vmem:[#allocation4 + $0x150] sm:$0xff]  ;;  %v361_v24 = vsub.f32 %v105_v2, %v233_v3  ;;  %v612_v32 = vadd.f32 %v611_v21, %v512_v1  ;;  %v202_v37 = vld [vmem:[#allocation4 + $0x18] sm:$0xff] }
  0x43   :  { %v311_v16 = vld [vmem:[#allocation4 + $0x380] sm:$0xff]  ;;  %v559_v62 = vmul.f32 %v431_v36, %v431_v36  ;;  %v369_v30 = vsub.f32 %v113_v8, %v241_v9  ;;  %v481_v34 = vmul.f32 %v353_v4, %v353_v4  ;;  %v74_v36 = vld [vmem:[#allocation2 + $0x18] sm:$0xff]  ;;  %v320_v46 = vld [vmem:[#allocation4 + $0x3c8] sm:$0xff]  ;;  %v338_v1 = vsub.f32 %v82_v43, %v210_v44 }
  0x44   :  { %v319_v29 = vld [vmem:[#allocation4 + $0x3c0] sm:$0xff]  ;;  %v439_v50 = vsub.f32 %v183_v14, %v311_v16  ;;  %v176_v14 = vld [vmem:[#allocation2 + $0x348] sm:$0xff]  ;;  %v602_v19 = vadd.f32 %v601_v5, %v551_v52  ;;  %v613_v47 = vadd.f32 %v612_v32, %v520_v18  ;;  %v544_v52 = vmul.f32 %v416_v26, %v416_v26  ;;  %v145_v53 = vld [vmem:[#allocation2 + $0x250] sm:$0xff] }
  0x45   :  { %v447_v51 = vsub.f32 %v191_v15, %v319_v29  ;;  %v184_v15 = vld [vmem:[#allocation2 + $0x388] sm:$0xff]  ;;  %v129_v29 = vld [vmem:[#allocation2 + $0x1d0] sm:$0xff]  ;;  %v497_v55 = vmul.f32 %v369_v30, %v369_v30  ;;  %v218_v57 = vld [vmem:[#allocation4 + $0x98] sm:$0xff]  ;;  %v330_v58 = vsub.f32 %v74_v36, %v202_v37  ;;  %v448_v2 = vsub.f32 %v192_v38, %v320_v46 }
  0x46   :  { %v567_v12 = vmul.f32 %v439_v50, %v439_v50  ;;  %v304_v16 = vld [vmem:[#allocation4 + $0x348] sm:$0xff]  ;;  %v603_v31 = vadd.f32 %v602_v19, %v559_v62  ;;  %v440_v40 = vsub.f32 %v184_v15, %v312_v20  ;;  %v489_v50 = vmul.f32 %v361_v24, %v361_v24  ;;  %v273_v61 = vld [vmem:[#allocation4 + $0x250] sm:$0xff]  ;;  %v98_v63 = vld [vmem:[#allocation2 + $0xd8] sm:$0xff] }
  0x47   :  { %v575_v13 = vmul.f32 %v447_v51, %v447_v51  ;;  %v432_v39 = vsub.f32 %v176_v14, %v304_v16  ;;  %v622_v51 = vadd.f32 %v621_v35, %v473_v25  ;;  %v385_v54 = vsub.f32 %v129_v29, %v257_v33  ;;  %v226_v0 = vld [vmem:[#allocation4 + $0xd8] sm:$0xff]  ;;  %v153_v4 = vld [vmem:[#allocation2 + $0x290] sm:$0xff] }
  0x48   :  { %v604_v45 = vadd.f32 %v603_v31, %v567_v12  ;;  %v614_v60 = vadd.f32 %v613_v47, %v528_v28  ;;  %v552_v3 = vmul.f32 %v424_v27, %v424_v27  ;;  %v393_v5 = vsub.f32 %v137_v48, %v265_v49  ;;  %v161_v8 = vld [vmem:[#allocation2 + $0x2d0] sm:$0xff]  ;;  %v106_v17 = vld [vmem:[#allocation2 + $0x118] sm:$0xff] }
  0x49   :  { %v623_v62 = vadd.f32 %v622_v51, %v481_v34  ;;  %v505_v6 = vmul.f32 %v377_v42, %v377_v42  ;;  %v169_v9 = vld [vmem:[#allocation2 + $0x310] sm:$0xff]  ;;  %v346_v12 = vsub.f32 %v90_v56, %v218_v57  ;;  %v560_v14 = vmul.f32 %v432_v39, %v432_v39  ;;  %v234_v18 = vld [vmem:[#allocation4 + $0x118] sm:$0xff]  ;;  %v75_v51 = vld [vmem:[#allocation2 + $0x20] sm:$0xff] }
  0x4a   :  { %v605_v59 = vadd.f32 %v604_v45, %v575_v13  ;;  %v615_v7 = vadd.f32 %v614_v60, %v536_v41  ;;  %v281_v10 = vld [vmem:[#allocation4 + $0x290] sm:$0xff]  ;;  %v401_v13 = vsub.f32 %v145_v53, %v273_v61  ;;  %v513_v16 = vmul.f32 %v385_v54, %v385_v54  ;;  %v114_v23 = vld [vmem:[#allocation2 + $0x158] sm:$0xff] }
  0x4b   :  { %v624_v11 = vadd.f32 %v623_v62, %v489_v50  ;;  %v289_v15 = vld [vmem:[#allocation4 + $0x2d0] sm:$0xff]  ;;  %v354_v19 = vsub.f32 %v98_v63, %v226_v0  ;;  %v242_v24 = vld [vmem:[#allocation4 + $0x158] sm:$0xff]  ;;  %v458_v25 = vmul.f32 %v330_v58, %v330_v58  ;;  %v466_v26 = vmul.f32 %v338_v1, %v338_v1  ;;  %v83_v58 = vld [vmem:[#allocation2 + $0x60] sm:$0xff] }
  0x4c   :  { %719 = vst [vmem:[%s859_s2] sm:$0xff] %v605_v59  ;;  %v616_v20 = vadd.f32 %v615_v7, %v544_v52  ;;  %v297_v21 = vld [vmem:[#allocation4 + $0x310] sm:$0xff]  ;;  %v568_v27 = vmul.f32 %v440_v40, %v440_v40  ;;  %v576_v28 = vmul.f32 %v448_v2, %v448_v2  ;;  %v409_v32 = vsub.f32 %v153_v4, %v281_v10  ;;  %v122_v37 = vld [vmem:[#allocation2 + $0x198] sm:$0xff]  ;;  %v203_v52 = vld [vmem:[#allocation4 + $0x20] sm:$0xff] }
  0x4d   :  { %v625_v22 = vadd.f32 %v624_v11, %v497_v55  ;;  %v177_v29 = vld [vmem:[#allocation2 + $0x350] sm:$0xff]  ;;  %v521_v33 = vmul.f32 %v393_v5, %v393_v5  ;;  %v250_v38 = vld [vmem:[#allocation4 + $0x198] sm:$0xff]  ;;  %v362_v39 = vsub.f32 %v106_v17, %v234_v18  ;;  %v474_v41 = vmul.f32 %v346_v12, %v346_v12  ;;  %v211_v59 = vld [vmem:[#allocation4 + $0x60] sm:$0xff] }
  0x4e   :  { %v185_v30 = vld [vmem:[#allocation2 + $0x390] sm:$0xff]  ;;  %v617_v34 = vadd.f32 %v616_v20, %v552_v3  ;;  %v417_v42 = vsub.f32 %v161_v8, %v289_v15  ;;  %v425_v43 = vsub.f32 %v169_v9, %v297_v21  ;;  %v529_v44 = vmul.f32 %v401_v13, %v401_v13  ;;  %v130_v45 = vld [vmem:[#allocation2 + $0x1d8] sm:$0xff]  ;;  %v91_v7 = vld [vmem:[#allocation2 + $0xa0] sm:$0xff] }
  0x4f   :  { %v305_v31 = vld [vmem:[#allocation4 + $0x350] sm:$0xff]  ;;  %v626_v36 = vadd.f32 %v625_v22, %v505_v6  ;;  %v370_v46 = vsub.f32 %v114_v23, %v242_v24  ;;  %v258_v48 = vld [vmem:[#allocation4 + $0x1d8] sm:$0xff]  ;;  %v482_v49 = vmul.f32 %v354_v19, %v354_v19  ;;  %v636_v50 = vadd.f32 %v466_v26, %v458_v25  ;;  %v219_v8 = vld [vmem:[#allocation4 + $0xa0] sm:$0xff] }
  0x50   :  { %v313_v35 = vld [vmem:[#allocation4 + $0x390] sm:$0xff]  ;;  %v618_v47 = vadd.f32 %v617_v34, %v560_v14  ;;  %v433_v54 = vsub.f32 %v177_v29, %v305_v31  ;;  %v537_v56 = vmul.f32 %v409_v32, %v409_v32  ;;  %v378_v57 = vsub.f32 %v122_v37, %v250_v38  ;;  %v138_v63 = vld [vmem:[#allocation2 + $0x218] sm:$0xff]  ;;  %v99_v15 = vld [vmem:[#allocation2 + $0xe0] sm:$0xff] }
  0x51   :  { %v627_v40 = vadd.f32 %v626_v36, %v513_v16  ;;  %v193_v53 = vld [vmem:[#allocation2 + $0x3d0] sm:$0xff]  ;;  %v441_v55 = vsub.f32 %v185_v30, %v313_v35  ;;  %v266_v0 = vld [vmem:[#allocation4 + $0x218] sm:$0xff]  ;;  %v490_v1 = vmul.f32 %v362_v39, %v362_v39  ;;  %v637_v2 = vadd.f32 %v636_v50, %v474_v41  ;;  %v227_v13 = vld [vmem:[#allocation4 + $0xe0] sm:$0xff] }
  0x52   :  { %v619_v60 = vadd.f32 %v618_v47, %v568_v27  ;;  %v321_v61 = vld [vmem:[#allocation4 + $0x3d0] sm:$0xff]  ;;  %v545_v3 = vmul.f32 %v417_v42, %v417_v42  ;;  %v146_v4 = vld [vmem:[#allocation2 + $0x258] sm:$0xff]  ;;  %v386_v5 = vsub.f32 %v130_v45, %v258_v48  ;;  %v498_v6 = vmul.f32 %v370_v46, %v370_v46  ;;  %v107_v32 = vld [vmem:[#allocation2 + $0x120] sm:$0xff] }
  0x53   :  { %v628_v62 = vadd.f32 %v627_v40, %v521_v33  ;;  %v331_v9 = vsub.f32 %v75_v51, %v203_v52  ;;  %v274_v12 = vld [vmem:[#allocation4 + $0x258] sm:$0xff]  ;;  %v638_v14 = vadd.f32 %v637_v2, %v482_v49  ;;  %v339_v16 = vsub.f32 %v83_v58, %v211_v59  ;;  %v235_v33 = vld [vmem:[#allocation4 + $0x120] sm:$0xff]  ;;  %v76_v2 = vld [vmem:[#allocation2 + $0x28] sm:$0xff] }
  0x54   :  { %v620_v10 = vadd.f32 %v619_v60, %v576_v28  ;;  %v449_v17 = vsub.f32 %v193_v53, %v321_v61  ;;  %v553_v18 = vmul.f32 %v425_v43, %v425_v43  ;;  %v154_v19 = vld [vmem:[#allocation2 + $0x298] sm:$0xff]  ;;  %v394_v20 = vsub.f32 %v138_v63, %v266_v0  ;;  %v115_v38 = vld [vmem:[#allocation2 + $0x160] sm:$0xff] }
  0x55   :  { %v629_v11 = vadd.f32 %v628_v62, %v529_v44  ;;  %v506_v21 = vmul.f32 %v378_v57, %v378_v57  ;;  %v162_v23 = vld [vmem:[#allocation2 + $0x2d8] sm:$0xff]  ;;  %v639_v26 = vadd.f32 %v638_v14, %v490_v1  ;;  %v347_v27 = vsub.f32 %v91_v7, %v219_v8  ;;  %v243_v39 = vld [vmem:[#allocation4 + $0x160] sm:$0xff] }
  0x56   :  { %v170_v24 = vld [vmem:[#allocation2 + $0x318] sm:$0xff]  ;;  %v561_v29 = vmul.f32 %v433_v54, %v433_v54  ;;  %v402_v28 = vsub.f32 %v146_v4, %v274_v12  ;;  %v514_v31 = vmul.f32 %v386_v5, %v386_v5  ;;  %v355_v34 = vsub.f32 %v99_v15, %v227_v13  ;;  %720 = vst [vmem:[%s859_s2 + $0x8] sm:$0xff] %v620_v10  ;;  %v123_v52 = vld [vmem:[#allocation2 + $0x1a0] sm:$0xff]  ;;  %v212_v10 = vld [vmem:[#allocation4 + $0x68] sm:$0xff] }
  0x57   :  { %v630_v22 = vadd.f32 %v629_v11, %v537_v56  ;;  %v282_v25 = vld [vmem:[#allocation4 + $0x298] sm:$0xff]  ;;  %v640_v37 = vadd.f32 %v639_v26, %v498_v6  ;;  %v459_v41 = vmul.f32 %v331_v9, %v331_v9  ;;  %v467_v42 = vmul.f32 %v339_v16, %v339_v16  ;;  %v251_v53 = vld [vmem:[#allocation4 + $0x1a0] sm:$0xff]  ;;  %v84_v9 = vld [vmem:[#allocation2 + $0x68] sm:$0xff] }
  0x58   :  { %v290_v30 = vld [vmem:[#allocation4 + $0x2d8] sm:$0xff]  ;;  %v569_v43 = vmul.f32 %v441_v55, %v441_v55  ;;  %v577_v44 = vmul.f32 %v449_v17, %v449_v17  ;;  %v410_v40 = vsub.f32 %v154_v19, %v282_v25  ;;  %v522_v48 = vmul.f32 %v394_v20, %v394_v20  ;;  %v131_v60 = vld [vmem:[#allocation2 + $0x1e0] sm:$0xff] }
  0x59   :  { %v631_v35 = vadd.f32 %v630_v22, %v545_v3  ;;  %v298_v36 = vld [vmem:[#allocation4 + $0x318] sm:$0xff]  ;;  %v641_v51 = vadd.f32 %v640_v37, %v506_v21  ;;  %v363_v54 = vsub.f32 %v107_v32, %v235_v33  ;;  %v475_v56 = vmul.f32 %v347_v27, %v347_v27  ;;  %v259_v63 = vld [vmem:[#allocation4 + $0x1e0] sm:$0xff]  ;;  %v204_v3 = vld [vmem:[#allocation4 + $0x28] sm:$0xff] }
  0x5a   :  { %v178_v45 = vld [vmem:[#allocation2 + $0x358] sm:$0xff]  ;;  %v418_v57 = vsub.f32 %v162_v23, %v290_v30  ;;  %v426_v58 = vsub.f32 %v170_v24, %v298_v36  ;;  %v530_v59 = vmul.f32 %v402_v28, %v402_v28  ;;  %v371_v61 = vsub.f32 %v115_v38, %v243_v39  ;;  %v139_v15 = vld [vmem:[#allocation2 + $0x220] sm:$0xff]  ;;  %v92_v22 = vld [vmem:[#allocation2 + $0xa8] sm:$0xff] }
  0x5b   :  { %v186_v46 = vld [vmem:[#allocation2 + $0x398] sm:$0xff]  ;;  %v632_v49 = vadd.f32 %v631_v35, %v553_v18  ;;  %v642_v55 = vadd.f32 %v641_v51, %v514_v31  ;;  %v483_v0 = vmul.f32 %v355_v34, %v355_v34  ;;  %v651_v1 = vadd.f32 %v467_v42, %v459_v41  ;;  %v267_v13 = vld [vmem:[#allocation4 + $0x220] sm:$0xff]  ;;  %v220_v23 = vld [vmem:[#allocation4 + $0xa8] sm:$0xff] }
  0x5c   :  { %v306_v47 = vld [vmem:[#allocation4 + $0x358] sm:$0xff]  ;;  %v538_v7 = vmul.f32 %v410_v40, %v410_v40  ;;  %v379_v8 = vsub.f32 %v123_v52, %v251_v53  ;;  %v491_v16 = vmul.f32 %v363_v54, %v363_v54  ;;  %v546_v18 = vmul.f32 %v418_v57, %v418_v57  ;;  %v147_v19 = vld [vmem:[#allocation2 + $0x260] sm:$0xff]  ;;  %v100_v30 = vld [vmem:[#allocation2 + $0xe8] sm:$0xff] }
  0x5d   :  { %v314_v50 = vld [vmem:[#allocation4 + $0x398] sm:$0xff]  ;;  %v633_v62 = vadd.f32 %v632_v49, %v561_v29  ;;  %v434_v5 = vsub.f32 %v178_v45, %v306_v47  ;;  %v643_v14 = vadd.f32 %v642_v55, %v522_v48  ;;  %v652_v17 = vadd.f32 %v651_v1, %v475_v56  ;;  %v275_v27 = vld [vmem:[#allocation4 + $0x260] sm:$0xff]  ;;  %v228_v28 = vld [vmem:[#allocation4 + $0xe8] sm:$0xff] }
  0x5e   :  { %v194_v4 = vld [vmem:[#allocation2 + $0x3d8] sm:$0xff]  ;;  %v442_v6 = vsub.f32 %v186_v46, %v314_v50  ;;  %v387_v20 = vsub.f32 %v131_v60, %v259_v63  ;;  %v499_v21 = vmul.f32 %v371_v61, %v371_v61  ;;  %v332_v24 = vsub.f32 %v76_v2, %v204_v3  ;;  %v155_v34 = vld [vmem:[#allocation2 + $0x2a0] sm:$0xff]  ;;  %v108_v40 = vld [vmem:[#allocation2 + $0x128] sm:$0xff] }
  0x5f   :  { %v634_v11 = vadd.f32 %v633_v62, %v569_v43  ;;  %v322_v12 = vld [vmem:[#allocation4 + $0x3d8] sm:$0xff]  ;;  %v644_v26 = vadd.f32 %v643_v14, %v530_v59  ;;  %v653_v29 = vadd.f32 %v652_v17, %v483_v0  ;;  %v340_v31 = vsub.f32 %v84_v9, %v212_v10  ;;  %v163_v38 = vld [vmem:[#allocation2 + $0x2e0] sm:$0xff]  ;;  %v236_v48 = vld [vmem:[#allocation4 + $0x128] sm:$0xff] }
  0x60   :  { %v450_v32 = vsub.f32 %v194_v4, %v322_v12  ;;  %v554_v33 = vmul.f32 %v426_v58, %v426_v58  ;;  %v395_v35 = vsub.f32 %v139_v15, %v267_v13  ;;  %v507_v36 = vmul.f32 %v379_v8, %v379_v8  ;;  %v171_v39 = vld [vmem:[#allocation2 + $0x320] sm:$0xff]  ;;  %v116_v53 = vld [vmem:[#allocation2 + $0x168] sm:$0xff]  ;;  %v77_v17 = vld [vmem:[#allocation2 + $0x30] sm:$0xff] }
  0x61   :  { %v635_v25 = vadd.f32 %v634_v11, %v577_v44  ;;  %v645_v37 = vadd.f32 %v644_v26, %v538_v7  ;;  %v283_v41 = vld [vmem:[#allocation4 + $0x2a0] sm:$0xff]  ;;  %v654_v42 = vadd.f32 %v653_v29, %v491_v16  ;;  %v348_v43 = vsub.f32 %v92_v22, %v220_v23  ;;  %v244_v54 = vld [vmem:[#allocation4 + $0x168] sm:$0xff] }
  0x62   :  { %v562_v45 = vmul.f32 %v434_v5, %v434_v5  ;;  %v291_v46 = vld [vmem:[#allocation4 + $0x2e0] sm:$0xff]  ;;  %v403_v44 = vsub.f32 %v147_v19, %v275_v27  ;;  %v515_v47 = vmul.f32 %v387_v20, %v387_v20  ;;  %v356_v49 = vsub.f32 %v100_v30, %v228_v28  ;;  %v124_v3 = vld [vmem:[#allocation2 + $0x1a8] sm:$0xff] }
  0x63   :  { %721 = vst [vmem:[%s859_s2 + $0x10] sm:$0xff] %v635_v25  ;;  %v646_v50 = vadd.f32 %v645_v37, %v546_v18  ;;  %v299_v51 = vld [vmem:[#allocation4 + $0x320] sm:$0xff]  ;;  %v655_v52 = vadd.f32 %v654_v42, %v499_v21  ;;  %v460_v56 = vmul.f32 %v332_v24, %v332_v24  ;;  %v468_v57 = vmul.f32 %v340_v31, %v340_v31  ;;  %v252_v4 = vld [vmem:[#allocation4 + $0x1a8] sm:$0xff]  ;;  %v205_v18 = vld [vmem:[#allocation4 + $0x30] sm:$0xff] }
  0x64   :  { %v570_v58 = vmul.f32 %v442_v6, %v442_v6  ;;  %v578_v59 = vmul.f32 %v450_v32, %v450_v32  ;;  %v179_v60 = vld [vmem:[#allocation2 + $0x360] sm:$0xff]  ;;  %v411_v55 = vsub.f32 %v155_v34, %v283_v41  ;;  %v523_v63 = vmul.f32 %v395_v35, %v395_v35  ;;  %v132_v11 = vld [vmem:[#allocation2 + $0x1e8] sm:$0xff]  ;;  %v85_v24 = vld [vmem:[#allocation2 + $0x70] sm:$0xff] }
  0x65   :  { %v187_v61 = vld [vmem:[#allocation2 + $0x3a0] sm:$0xff]  ;;  %v647_v0 = vadd.f32 %v646_v50, %v554_v33  ;;  %v656_v2 = vadd.f32 %v655_v52, %v507_v36  ;;  %v364_v5 = vsub.f32 %v108_v40, %v236_v48  ;;  %v476_v7 = vmul.f32 %v348_v43, %v348_v43  ;;  %v260_v15 = vld [vmem:[#allocation4 + $0x1e8] sm:$0xff]  ;;  %v213_v25 = vld [vmem:[#allocation4 + $0x70] sm:$0xff] }
  0x66   :  { %v307_v62 = vld [vmem:[#allocation4 + $0x360] sm:$0xff]  ;;  %v419_v8 = vsub.f32 %v163_v38, %v291_v46  ;;  %v427_v9 = vsub.f32 %v171_v39, %v299_v51  ;;  %v531_v10 = vmul.f32 %v403_v44, %v403_v44  ;;  %v372_v12 = vsub.f32 %v116_v53, %v244_v54  ;;  %v140_v30 = vld [vmem:[#allocation2 + $0x228] sm:$0xff]  ;;  %v93_v37 = vld [vmem:[#allocation2 + $0xb0] sm:$0xff] }
  0x67   :  { %v315_v1 = vld [vmem:[#allocation4 + $0x3a0] sm:$0xff]  ;;  %v648_v14 = vadd.f32 %v647_v0, %v562_v45  ;;  %v657_v6 = vadd.f32 %v656_v2, %v515_v47  ;;  %v484_v13 = vmul.f32 %v356_v49, %v356_v49  ;;  %v666_v16 = vadd.f32 %v468_v57, %v460_v56  ;;  %v268_v28 = vld [vmem:[#allocation4 + $0x228] sm:$0xff]  ;;  %v221_v38 = vld [vmem:[#allocation4 + $0xb0] sm:$0xff] }
  0x68   :  { %v195_v19 = vld [vmem:[#allocation2 + $0x3e0] sm:$0xff]  ;;  %v435_v20 = vsub.f32 %v179_v60, %v307_v62  ;;  %v443_v21 = vsub.f32 %v187_v61, %v315_v1  ;;  %v539_v22 = vmul.f32 %v411_v55, %v411_v55  ;;  %v380_v23 = vsub.f32 %v124_v3, %v252_v4  ;;  %v148_v34 = vld [vmem:[#allocation2 + $0x268] sm:$0xff]  ;;  %v101_v46 = vld [vmem:[#allocation2 + $0xf0] sm:$0xff] }
  0x69   :  { %v649_v26 = vadd.f32 %v648_v14, %v570_v58  ;;  %v323_v27 = vld [vmem:[#allocation4 + $0x3e0] sm:$0xff]  ;;  %v658_v29 = vadd.f32 %v657_v6, %v523_v63  ;;  %v492_v31 = vmul.f32 %v364_v5, %v364_v5  ;;  %v667_v32 = vadd.f32 %v666_v16, %v476_v7  ;;  %v276_v43 = vld [vmem:[#allocation4 + $0x268] sm:$0xff]  ;;  %v229_v44 = vld [vmem:[#allocation4 + $0xf0] sm:$0xff] }
  0x6a   :  { %v547_v33 = vmul.f32 %v419_v8, %v419_v8  ;;  %v388_v35 = vsub.f32 %v132_v11, %v260_v15  ;;  %v500_v36 = vmul.f32 %v372_v12, %v372_v12  ;;  %v333_v39 = vsub.f32 %v77_v17, %v205_v18  ;;  %v156_v49 = vld [vmem:[#allocation2 + $0x2a8] sm:$0xff]  ;;  %v109_v55 = vld [vmem:[#allocation2 + $0x130] sm:$0xff] }
  0x6b   :  { %v650_v41 = vadd.f32 %v649_v26, %v578_v59  ;;  %v659_v42 = vadd.f32 %v658_v29, %v531_v10  ;;  %v668_v45 = vadd.f32 %v667_v32, %v484_v13  ;;  %v341_v47 = vsub.f32 %v85_v24, %v213_v25  ;;  %v164_v53 = vld [vmem:[#allocation2 + $0x2e8] sm:$0xff]  ;;  %v237_v63 = vld [vmem:[#allocation4 + $0x130] sm:$0xff]  ;;  %v78_v32 = vld [vmem:[#allocation2 + $0x38] sm:$0xff] }
  0x6c   :  { %v451_v40 = vsub.f32 %v195_v19, %v323_v27  ;;  %v555_v48 = vmul.f32 %v427_v9, %v427_v9  ;;  %v396_v50 = vsub.f32 %v140_v30, %v268_v28  ;;  %v508_v51 = vmul.f32 %v380_v23, %v380_v23  ;;  %v172_v54 = vld [vmem:[#allocation2 + $0x328] sm:$0xff]  ;;  %v117_v4 = vld [vmem:[#allocation2 + $0x170] sm:$0xff] }
  0x6d   :  { %v660_v52 = vadd.f32 %v659_v42, %v539_v22  ;;  %v284_v56 = vld [vmem:[#allocation4 + $0x2a8] sm:$0xff]  ;;  %v669_v57 = vadd.f32 %v668_v45, %v492_v31  ;;  %v349_v58 = vsub.f32 %v93_v37, %v221_v38  ;;  %v563_v60 = vmul.f32 %v435_v20, %v435_v20  ;;  %722 = vst [vmem:[%s859_s2 + $0x18] sm:$0xff] %v650_v41  ;;  %v245_v5 = vld [vmem:[#allocation4 + $0x170] sm:$0xff]  ;;  %v214_v41 = vld [vmem:[#allocation4 + $0x78] sm:$0xff] }
  0x6e   :  { %v292_v61 = vld [vmem:[#allocation4 + $0x2e8] sm:$0xff]  ;;  %v404_v59 = vsub.f32 %v148_v34, %v276_v43  ;;  %v516_v62 = vmul.f32 %v388_v35, %v388_v35  ;;  %v357_v0 = vsub.f32 %v101_v46, %v229_v44  ;;  %v461_v7 = vmul.f32 %v333_v39, %v333_v39  ;;  %v125_v18 = vld [vmem:[#allocation2 + $0x1b0] sm:$0xff]  ;;  %v86_v39 = vld [vmem:[#allocation2 + $0x78] sm:$0xff] }
  0x6f   :  { %v661_v1 = vadd.f32 %v660_v52, %v547_v33  ;;  %v300_v2 = vld [vmem:[#allocation4 + $0x328] sm:$0xff]  ;;  %v670_v3 = vadd.f32 %v669_v57, %v500_v36  ;;  %v469_v8 = vmul.f32 %v341_v47, %v341_v47  ;;  %v571_v9 = vmul.f32 %v443_v21, %v443_v21  ;;  %v253_v19 = vld [vmem:[#allocation4 + $0x1b0] sm:$0xff]  ;;  %v206_v33 = vld [vmem:[#allocation4 + $0x38] sm:$0xff] }
  0x70   :  { %v579_v10 = vmul.f32 %v451_v40, %v451_v40  ;;  %v180_v11 = vld [vmem:[#allocation2 + $0x368] sm:$0xff]  ;;  %v412_v6 = vsub.f32 %v156_v49, %v284_v56  ;;  %v524_v15 = vmul.f32 %v396_v50, %v396_v50  ;;  %v365_v20 = vsub.f32 %v109_v55, %v237_v63  ;;  %v133_v26 = vld [vmem:[#allocation2 + $0x1f0] sm:$0xff]  ;;  %v94_v52 = vld [vmem:[#allocation2 + $0xb8] sm:$0xff] }
  0x71   :  { %v188_v12 = vld [vmem:[#allocation2 + $0x3a8] sm:$0xff]  ;;  %v662_v13 = vadd.f32 %v661_v1, %v555_v48  ;;  %v671_v17 = vadd.f32 %v670_v3, %v508_v51  ;;  %v477_v22 = vmul.f32 %v349_v58, %v349_v58  ;;  %v420_v23 = vsub.f32 %v164_v53, %v292_v61  ;;  %v261_v30 = vld [vmem:[#allocation4 + $0x1f0] sm:$0xff]  ;;  %v222_v53 = vld [vmem:[#allocation4 + $0xb8] sm:$0xff] }
  0x72   :  { %v308_v14 = vld [vmem:[#allocation4 + $0x368] sm:$0xff]  ;;  %v428_v24 = vsub.f32 %v172_v54, %v300_v2  ;;  %v532_v25 = vmul.f32 %v404_v59, %v404_v59  ;;  %v373_v27 = vsub.f32 %v117_v4, %v245_v5  ;;  %v485_v28 = vmul.f32 %v357_v0, %v357_v0  ;;  %v141_v46 = vld [vmem:[#allocation2 + $0x230] sm:$0xff]  ;;  %v102_v61 = vld [vmem:[#allocation2 + $0xf8] sm:$0xff] }
  0x73   :  { %v316_v16 = vld [vmem:[#allocation4 + $0x3a8] sm:$0xff]  ;;  %v663_v29 = vadd.f32 %v662_v13, %v563_v60  ;;  %v672_v21 = vadd.f32 %v671_v17, %v516_v62  ;;  %v681_v31 = vadd.f32 %v469_v8, %v461_v7  ;;  %v436_v35 = vsub.f32 %v180_v11, %v308_v14  ;;  %v269_v44 = vld [vmem:[#allocation4 + $0x230] sm:$0xff]  ;;  %v230_v59 = vld [vmem:[#allocation4 + $0xf8] sm:$0xff] }
  0x74   :  { %v196_v34 = vld [vmem:[#allocation2 + $0x3e8] sm:$0xff]  ;;  %v444_v36 = vsub.f32 %v188_v12, %v316_v16  ;;  %v540_v37 = vmul.f32 %v412_v6, %v412_v6  ;;  %v381_v38 = vsub.f32 %v125_v18, %v253_v19  ;;  %v493_v47 = vmul.f32 %v365_v20, %v365_v20  ;;  %v149_v49 = vld [vmem:[#allocation2 + $0x270] sm:$0xff]  ;;  %v238_v14 = vld [vmem:[#allocation4 + $0x138] sm:$0xff] }
  0x75   :  { %v664_v42 = vadd.f32 %v663_v29, %v571_v9  ;;  %v324_v43 = vld [vmem:[#allocation4 + $0x3e8] sm:$0xff]  ;;  %v673_v45 = vadd.f32 %v672_v21, %v524_v15  ;;  %v682_v40 = vadd.f32 %v681_v31, %v477_v22  ;;  %v548_v48 = vmul.f32 %v420_v23, %v420_v23  ;;  %v277_v58 = vld [vmem:[#allocation4 + $0x270] sm:$0xff]  ;;  %v118_v17 = vld [vmem:[#allocation2 + $0x178] sm:$0xff] }
  0x76   :  { %v389_v50 = vsub.f32 %v133_v26, %v261_v30  ;;  %v501_v51 = vmul.f32 %v373_v27, %v373_v27  ;;  %v334_v54 = vsub.f32 %v78_v32, %v206_v33  ;;  %v342_v62 = vsub.f32 %v86_v39, %v214_v41  ;;  %v157_v3 = vld [vmem:[#allocation2 + $0x2b0] sm:$0xff]  ;;  %v246_v18 = vld [vmem:[#allocation4 + $0x178] sm:$0xff] }
  0x77   :  { %v665_v56 = vadd.f32 %v664_v42, %v579_v10  ;;  %v674_v57 = vadd.f32 %v673_v45, %v532_v25  ;;  %v683_v60 = vadd.f32 %v682_v40, %v485_v28  ;;  %v452_v55 = vsub.f32 %v196_v34, %v324_v43  ;;  %v285_v4 = vld [vmem:[#allocation4 + $0x2b0] sm:$0xff]  ;;  %v110_v10 = vld [vmem:[#allocation2 + $0x138] sm:$0xff] }
  0x78   :  { %v556_v63 = vmul.f32 %v428_v24, %v428_v24  ;;  %v397_v0 = vsub.f32 %v141_v46, %v269_v44  ;;  %v509_v1 = vmul.f32 %v381_v38, %v381_v38  ;;  %v350_v7 = vsub.f32 %v94_v52, %v222_v53  ;;  %v165_v9 = vld [vmem:[#allocation2 + $0x2f0] sm:$0xff]  ;;  %v126_v21 = vld [vmem:[#allocation2 + $0x1b8] sm:$0xff] }
  0x79   :  { %v675_v2 = vadd.f32 %v674_v57, %v540_v37  ;;  %v684_v5 = vadd.f32 %v683_v60, %v493_v47  ;;  %v564_v8 = vmul.f32 %v436_v35, %v436_v35  ;;  %v405_v11 = vsub.f32 %v149_v49, %v277_v58  ;;  %723 = vst [vmem:[%s859_s2 + $0x20] sm:$0xff] %v665_v56  ;;  %v293_v13 = vld [vmem:[#allocation4 + $0x2f0] sm:$0xff]  ;;  %v254_v30 = vld [vmem:[#allocation4 + $0x1b8] sm:$0xff] }
  0x7a   :  { %v517_v12 = vmul.f32 %v389_v50, %v389_v50  ;;  %v358_v6 = vsub.f32 %v102_v61, %v230_v59  ;;  %v462_v19 = vmul.f32 %v334_v54, %v334_v54  ;;  %v470_v20 = vmul.f32 %v342_v62, %v342_v62  ;;  %v173_v23 = vld [vmem:[#allocation2 + $0x330] sm:$0xff]  ;;  %v134_v42 = vld [vmem:[#allocation2 + $0x1f8] sm:$0xff] }
  0x7b   :  { %v676_v15 = vadd.f32 %v675_v2, %v548_v48  ;;  %v685_v16 = vadd.f32 %v684_v5, %v501_v51  ;;  %v572_v22 = vmul.f32 %v444_v36, %v444_v36  ;;  %v413_v24 = vsub.f32 %v157_v3, %v285_v4  ;;  %v301_v27 = vld [vmem:[#allocation4 + $0x330] sm:$0xff]  ;;  %v262_v36 = vld [vmem:[#allocation4 + $0x1f8] sm:$0xff] }
  0x7c   :  { %v525_v25 = vmul.f32 %v397_v0, %v397_v0  ;;  %v366_v28 = vsub.f32 %v110_v10, %v238_v14  ;;  %v478_v31 = vmul.f32 %v350_v7, %v350_v7  ;;  %v580_v32 = vmul.f32 %v452_v55, %v452_v55  ;;  %v181_v33 = vld [vmem:[#allocation2 + $0x370] sm:$0xff]  ;;  %v142_v51 = vld [vmem:[#allocation2 + $0x238] sm:$0xff] }
  0x7d   :  { %v677_v26 = vadd.f32 %v676_v15, %v556_v63  ;;  %v686_v29 = vadd.f32 %v685_v16, %v509_v1  ;;  %v421_v34 = vsub.f32 %v165_v9, %v293_v13  ;;  %v533_v35 = vmul.f32 %v405_v11, %v405_v11  ;;  %v309_v39 = vld [vmem:[#allocation4 + $0x370] sm:$0xff]  ;;  %v270_v52 = vld [vmem:[#allocation4 + $0x238] sm:$0xff] }
  0x7e   :  { %v374_v37 = vsub.f32 %v118_v17, %v246_v18  ;;  %v486_v43 = vmul.f32 %v358_v6, %v358_v6  ;;  %v696_v45 = vadd.f32 %v470_v20, %v462_v19  ;;  %v189_v46 = vld [vmem:[#allocation2 + $0x3b0] sm:$0xff]  ;;  %v429_v44 = vsub.f32 %v173_v23, %v301_v27  ;;  %v150_v2 = vld [vmem:[#allocation2 + $0x278] sm:$0xff] }
  0x7f   :  { %v678_v38 = vadd.f32 %v677_v26, %v564_v8  ;;  %v687_v41 = vadd.f32 %v686_v29, %v517_v12  ;;  %v541_v47 = vmul.f32 %v413_v24, %v413_v24  ;;  %v382_v40 = vsub.f32 %v126_v21, %v254_v30  ;;  %v317_v49 = vld [vmem:[#allocation4 + $0x3b0] sm:$0xff]  ;;  %v278_v3 = vld [vmem:[#allocation4 + $0x278] sm:$0xff] }
  0x80   :  { %v494_v53 = vmul.f32 %v366_v28, %v366_v28  ;;  %v697_v54 = vadd.f32 %v696_v45, %v478_v31  ;;  %v437_v56 = vsub.f32 %v181_v33, %v309_v39  ;;  %v549_v57 = vmul.f32 %v421_v34, %v421_v34  ;;  %v197_v61 = vld [vmem:[#allocation2 + $0x3f0] sm:$0xff]  ;;  %v158_v12 = vld [vmem:[#allocation2 + $0x2b8] sm:$0xff] }
  0x81   :  { %v679_v48 = vadd.f32 %v678_v38, %v572_v22  ;;  %v688_v50 = vadd.f32 %v687_v41, %v525_v25  ;;  %v390_v58 = vsub.f32 %v134_v42, %v262_v36  ;;  %v325_v59 = vld [vmem:[#allocation4 + $0x3f0] sm:$0xff]  ;;  %v502_v55 = vmul.f32 %v374_v37, %v374_v37  ;;  %v286_v10 = vld [vmem:[#allocation4 + $0x2b8] sm:$0xff] }
  0x82   :  { %v698_v63 = vadd.f32 %v697_v54, %v486_v43  ;;  %v445_v0 = vsub.f32 %v189_v46, %v317_v49  ;;  %v557_v1 = vmul.f32 %v429_v44, %v429_v44  ;;  %v398_v4 = vsub.f32 %v142_v51, %v270_v52  ;;  %v166_v17 = vld [vmem:[#allocation2 + $0x2f8] sm:$0xff] }
  0x83   :  { %v680_v60 = vadd.f32 %v679_v48, %v580_v32  ;;  %v689_v62 = vadd.f32 %v688_v50, %v533_v35  ;;  %v510_v7 = vmul.f32 %v382_v40, %v382_v40  ;;  %v453_v9 = vsub.f32 %v197_v61, %v325_v59  ;;  %v294_v18 = vld [vmem:[#allocation4 + $0x2f8] sm:$0xff] }
  0x84   :  { %v699_v8 = vadd.f32 %v698_v63, %v494_v53  ;;  %v565_v11 = vmul.f32 %v437_v56, %v437_v56  ;;  %v406_v6 = vsub.f32 %v150_v2, %v278_v3  ;;  %v518_v15 = vmul.f32 %v390_v58, %v390_v58  ;;  %v174_v25 = vld [vmem:[#allocation2 + $0x338] sm:$0xff] }
  0x85   :  { %v690_v5 = vadd.f32 %v689_v62, %v541_v47  ;;  %724 = vst [vmem:[%s859_s2 + $0x28] sm:$0xff] %v680_v60  ;;  %v573_v16 = vmul.f32 %v445_v0, %v445_v0  ;;  %v414_v20 = vsub.f32 %v158_v12, %v286_v10  ;;  %v526_v22 = vmul.f32 %v398_v4, %v398_v4  ;;  %v302_v26 = vld [vmem:[#allocation4 + $0x338] sm:$0xff] }
  0x86   :  { %v700_v13 = vadd.f32 %v699_v8, %v502_v55  ;;  %v581_v24 = vmul.f32 %v453_v9, %v453_v9  ;;  %v422_v29 = vsub.f32 %v166_v17, %v294_v18  ;;  %v534_v21 = vmul.f32 %v406_v6, %v406_v6  ;;  %v182_v28 = vld [vmem:[#allocation2 + $0x378] sm:$0xff] }
  0x87   :  { %v691_v14 = vadd.f32 %v690_v5, %v549_v57  ;;  %v310_v31 = vld [vmem:[#allocation4 + $0x378] sm:$0xff]  ;;  %v430_v33 = vsub.f32 %v174_v25, %v302_v26  ;;  %v542_v34 = vmul.f32 %v414_v20, %v414_v20 }
  0x88   :  { %v701_v23 = vadd.f32 %v700_v13, %v510_v7  ;;  %v190_v37 = vld [vmem:[#allocation2 + $0x3b8] sm:$0xff]  ;;  %v438_v41 = vsub.f32 %v182_v28, %v310_v31  ;;  %v550_v42 = vmul.f32 %v422_v29, %v422_v29 }
  0x89   :  { %v692_v19 = vadd.f32 %v691_v14, %v557_v1  ;;  %v318_v38 = vld [vmem:[#allocation4 + $0x3b8] sm:$0xff]  ;;  %v558_v44 = vmul.f32 %v430_v33, %v430_v33 }
  0x8a   :  { %v702_v30 = vadd.f32 %v701_v23, %v518_v15  ;;  %v198_v43 = vld [vmem:[#allocation2 + $0x3f8] sm:$0xff]  ;;  %v446_v46 = vsub.f32 %v190_v37, %v318_v38  ;;  %v566_v48 = vmul.f32 %v438_v41, %v438_v41 }
  0x8b   :  { %v693_v27 = vadd.f32 %v692_v19, %v565_v11  ;;  %v326_v45 = vld [vmem:[#allocation4 + $0x3f8] sm:$0xff] }
  0x8c   :  { %v703_v35 = vadd.f32 %v702_v30, %v526_v22  ;;  %v454_v40 = vsub.f32 %v198_v43, %v326_v45  ;;  %v574_v50 = vmul.f32 %v446_v46, %v446_v46 }
  0x8d   :  { %v694_v32 = vadd.f32 %v693_v27, %v573_v16 }
  0x8e   :  { %v704_v36 = vadd.f32 %v703_v35, %v534_v21  ;;  %v582_v52 = vmul.f32 %v454_v40, %v454_v40 }
  0x8f   :  { %v695_v39 = vadd.f32 %v694_v32, %v581_v24 }
  0x90   :  { %v705_v47 = vadd.f32 %v704_v36, %v542_v34 }
  0x91   :  { %725 = vst [vmem:[%s859_s2 + $0x30] sm:$0xff] %v695_v39 }
  0x92   :  { %v706_v49 = vadd.f32 %v705_v47, %v550_v42 }
  0x94   :  { %v707_v51 = vadd.f32 %v706_v49, %v558_v44 }
  0x96   :  { %v708_v53 = vadd.f32 %v707_v51, %v566_v48 }
  0x98   :  { %v709_v54 = vadd.f32 %v708_v53, %v574_v50 }
  0x9a   :  { %v710_v56 = vadd.f32 %v709_v54, %v582_v52 }
  0x9c   :  { %726 = vst [vmem:[%s859_s2 + $0x38] sm:$0xff] %v710_v56 }
  0x9d   :  { %731 = vsyncpa [#allocation3], 1 }
  0x9e   :  { %732 = vsyncpa [#allocation5], 1 }

</bundles_post_ra>
